<compile_context>
chip_gen: v6e
topology: v6e:2x2x1
jax: 0.10.0
libtpu: 0.0.40
codegen_flags: <defaults>
</compile_context>

<pallas_src>
import jax
import jax.numpy as jnp
from jax.experimental import pallas as pl
from jax.experimental.pallas import tpu as pltpu


def _backlash_inv_kernel(x_ref, xp_ref, up_ref, w_ref, u_ref):
    x = x_ref[...]            # (TM, TN)
    xp = xp_ref[...]          # (TM, TN)
    up = up_ref[...]          # (TM, TN)

    w = w_ref[...]            # (TM, 4): [inv_m_up, inv_m_lo, c_up, c_lo]
    inv_m_up = w[:, 0:1]      # (TM, 1) -> lane-broadcast over TN
    inv_m_lo = w[:, 1:2]
    c_up = w[:, 2:3]
    c_lo = w[:, 3:4]

    u_up = x * inv_m_up - c_up
    u_lo = x * inv_m_lo - c_lo
    # x > xp: rising branch; xp > x: falling branch; equal: hold previous u.
    u_ref[...] = jnp.where(x > xp, u_up, jnp.where(xp > x, u_lo, up))


def _round_up(v, m):
    return ((v + m - 1) // m) * m


def backlash_inv(x_curr, x_prev, u_pre, weights, *, block_rows=256, block_cols=1024):
    B, N, T = x_curr.shape
    assert weights.shape == (B, N, 4)
    dtype = x_curr.dtype
    itemsize = jnp.dtype(dtype).itemsize
    rows = B * N

    # Sublane granularity: 8 rows for 4-byte dtypes, 16 for 2-byte, 32 for 1-byte.
    sub = max(8, 32 // itemsize)

    # Block dims: either full extent (always legal) or (sub, 128)-aligned tiles
    # with a cdiv grid + masked partial edge blocks.  No wrapper-side padding.
    TM = rows if rows <= block_rows else block_rows
    TN = T if T <= block_cols else block_cols

    # Guarantee >= 2 blocks along a "parallel" axis (v7x has 2 TensorCores);
    # no-op when the grid already has more than one block.
    if pl.cdiv(rows, TM) * pl.cdiv(T, TN) < 2:
        if T >= 256:
            TN = _round_up(-(-T // 2), 128)      # ceil(T/2) rounded to 128, <= T
        elif rows >= 2 * sub:
            TM = _round_up(-(-rows // 2), sub)   # ceil(rows/2) rounded to sub, <= rows

    grid = (pl.cdiv(rows, TM), pl.cdiv(T, TN))

    # Free reshapes only -- no HBM copies of the big arrays.
    x2 = x_curr.reshape(rows, T)
    xp2 = x_prev.reshape(rows, T)
    up2 = u_pre.reshape(rows, T)

    # Hoist slope reciprocals into the wrapper (tiny (rows,) work), computed in
    # float32 regardless of the I/O dtype, then packed into one (rows, 4) array:
    # columns = [inv_m_up, inv_m_lo, c_up, c_lo].
    w32 = weights.reshape(rows, 4).astype(jnp.float32)
    wcols = jnp.stack(
        [1.0 / w32[:, 1], 1.0 / w32[:, 0], w32[:, 3], w32[:, 2]], axis=-1
    ).astype(dtype)

    data_spec = pl.BlockSpec((TM, TN), lambda i, j: (i, j))
    # Single packed weight block; same block index for every T chunk -> resident.
    w_spec = pl.BlockSpec((TM, 4), lambda i, j: (i, 0))

    # 4 double-buffered (TM, TN) streams + small weight block, with headroom.
    tile_bytes = TM * TN * itemsize
    vmem_limit = int(min(32 * 1024 * 1024,
                         max(16 * 1024 * 1024, 8 * tile_bytes + (1 << 20))))

    cost = pl.CostEstimate(
        flops=8 * rows * T,
        bytes_accessed=4 * rows * T * itemsize + rows * 4 * itemsize,
        transcendentals=0,
    )

    u2 = pl.pallas_call(
        _backlash_inv_kernel,
        out_shape=jax.ShapeDtypeStruct((rows, T), dtype),
        grid=grid,
        in_specs=[data_spec, data_spec, data_spec, w_spec],
        out_specs=data_spec,
        compiler_params=pltpu.CompilerParams(
            dimension_semantics=("parallel", "parallel"),
            vmem_limit_bytes=vmem_limit),
        cost_estimate=cost,
    )(x2, xp2, up2, wcols)

    u = u2.reshape(B, N, T)
    # Module returns (u, weights) -- weights pass through untouched.
    return u, weights


def _reference(x_curr, x_prev, u_pre, weights):
    m_lo = weights[:, :, 0][..., None]
    m_up = weights[:, :, 1][..., None]
    c_lo = weights[:, :, 2][..., None]
    c_up = weights[:, :, 3][..., None]
    f1 = (x_curr - x_prev > 0).astype(x_curr.dtype)
    f2 = (x_prev - x_curr > 0).astype(x_curr.dtype)
    return ((x_curr / m_up - c_up) * f1
            + (x_curr / m_lo - c_lo) * f2
            + u_pre * (1.0 - f1) * (1.0 - f2))


def _make_inputs(key, B, N, T):
    k1, k2, k3, k4, k5 = jax.random.split(key, 5)
    x_curr = jax.random.normal(k1, (B, N, T), dtype=jnp.float32)
    x_prev = jax.random.normal(k2, (B, N, T), dtype=jnp.float32)
    # Include exact-equality points to exercise the "hold previous u" branch.
    x_prev = x_prev.at[:, :, 0].set(x_curr[:, :, 0])
    u_pre = jax.random.normal(k3, (B, N, T), dtype=jnp.float32)
    # weights: [m_lo, m_up, c_lo, c_up]; slopes kept away from zero.
    slopes = 1.0 + 0.5 * jax.random.uniform(k4, (B, N, 2), dtype=jnp.float32)
    offsets = 0.1 * jax.random.normal(k5, (B, N, 2), dtype=jnp.float32)
    weights = jnp.concatenate([slopes, offsets], axis=-1)
    return x_curr, x_prev, u_pre, weights


if __name__ == "__main__":
    key = jax.random.PRNGKey(0)
    key_a, key_b = jax.random.split(key, 2)

    # Small shape consistent with the module's forward (batch=2, channels=4, T=16).
    B, N, T = 2, 4, 16
    x_curr, x_prev, u_pre, weights = _make_inputs(key_a, B, N, T)
    u, w_out = backlash_inv(x_curr, x_prev, u_pre, weights)
    u = jax.block_until_ready(u)
    w_out = jax.block_until_ready(w_out)
    u_ref = _reference(x_curr, x_prev, u_pre, weights)
    assert u.shape == (B, N, T)
    assert w_out.shape == (B, N, 4)
    assert jnp.allclose(u, u_ref, atol=1e-5, rtol=1e-5)
    assert jnp.array_equal(w_out, weights)

    # Non-aligned shape: rows=15, T=300 -> TN split to 256, grid (1, 2), masked
    # partial edge block.  Exercises the cdiv / megacore-split paths.
    B2, N2, T2 = 3, 5, 300
    x_curr2, x_prev2, u_pre2, weights2 = _make_inputs(key_b, B2, N2, T2)
    u2, w_out2 = backlash_inv(x_curr2, x_prev2, u_pre2, weights2)
    u2 = jax.block_until_ready(u2)
    u2_ref = _reference(x_curr2, x_prev2, u_pre2, weights2)
    assert u2.shape == (B2, N2, T2)
    assert jnp.allclose(u2, u2_ref, atol=1e-5, rtol=1e-5)
    assert jnp.array_equal(w_out2, weights2)

    print("KERNEL_OK")
</pallas_src>

<mosaic_0001>
module attributes {stable_mosaic.version = 11 : i64} {
  func.func @_backlash_inv_kernel(%arg0: i32, %arg1: i32, %arg2: memref<8x16xf32, #tpu.memory_space<vmem>>, %arg3: memref<8x16xf32, #tpu.memory_space<vmem>>, %arg4: memref<8x16xf32, #tpu.memory_space<vmem>>, %arg5: memref<8x4xf32, #tpu.memory_space<vmem>>, %arg6: memref<8x16xf32, #tpu.memory_space<vmem>>) attributes {dimension_semantics = [#tpu.dimension_semantics<parallel>, #tpu.dimension_semantics<parallel>], iteration_bounds = array<i64: 1, 1>, scalar_prefetch = 0 : i64, scratch_operands = 0 : i64, tpu.core_type = #tpu.core_type<tc>, window_params = [{transform_indices = @transform_0, window_bounds = array<i64: 8, 16>}, {transform_indices = @transform_1, window_bounds = array<i64: 8, 16>}, {transform_indices = @transform_2, window_bounds = array<i64: 8, 16>}, {transform_indices = @transform_3, window_bounds = array<i64: 8, 4>}, {transform_indices = @transform_4, window_bounds = array<i64: 8, 16>}]} {
    %c0 = arith.constant 0 : index
    %c0_0 = arith.constant 0 : index
    %0 = vector.load %arg2[%c0, %c0_0] : memref<8x16xf32, #tpu.memory_space<vmem>>, vector<8x16xf32>
    %c0_1 = arith.constant 0 : index
    %c0_2 = arith.constant 0 : index
    %1 = vector.load %arg3[%c0_1, %c0_2] : memref<8x16xf32, #tpu.memory_space<vmem>>, vector<8x16xf32>
    %c0_3 = arith.constant 0 : index
    %c0_4 = arith.constant 0 : index
    %2 = vector.load %arg4[%c0_3, %c0_4] : memref<8x16xf32, #tpu.memory_space<vmem>>, vector<8x16xf32>
    %c0_5 = arith.constant 0 : index
    %c0_6 = arith.constant 0 : index
    %3 = vector.load %arg5[%c0_5, %c0_6] : memref<8x4xf32, #tpu.memory_space<vmem>>, vector<8x4xf32>
    %4 = vector.extract_strided_slice %3 {offsets = [0, 0], sizes = [8, 1], strides = [1, 1]} : vector<8x4xf32> to vector<8x1xf32>
    %5 = vector.extract_strided_slice %3 {offsets = [0, 1], sizes = [8, 1], strides = [1, 1]} : vector<8x4xf32> to vector<8x1xf32>
    %6 = vector.extract_strided_slice %3 {offsets = [0, 2], sizes = [8, 1], strides = [1, 1]} : vector<8x4xf32> to vector<8x1xf32>
    %7 = vector.extract_strided_slice %3 {offsets = [0, 3], sizes = [8, 1], strides = [1, 1]} : vector<8x4xf32> to vector<8x1xf32>
    %8 = vector.broadcast %4 : vector<8x1xf32> to vector<8x16xf32>
    %9 = arith.mulf %0, %8 : vector<8x16xf32>
    %10 = vector.broadcast %6 : vector<8x1xf32> to vector<8x16xf32>
    %11 = arith.subf %9, %10 : vector<8x16xf32>
    %12 = vector.broadcast %5 : vector<8x1xf32> to vector<8x16xf32>
    %13 = arith.mulf %0, %12 : vector<8x16xf32>
    %14 = vector.broadcast %7 : vector<8x1xf32> to vector<8x16xf32>
    %15 = arith.subf %13, %14 : vector<8x16xf32>
    %16 = arith.cmpf ogt, %0, %1 : vector<8x16xf32>
    %17 = arith.cmpf ogt, %1, %0 : vector<8x16xf32>
    %18 = arith.select %17, %15, %2 : vector<8x16xi1>, vector<8x16xf32>
    %19 = arith.select %16, %11, %18 : vector<8x16xi1>, vector<8x16xf32>
    %c0_7 = arith.constant 0 : index
    %c0_8 = arith.constant 0 : index
    %20 = vector.load %arg6[%c0_7, %c0_8] : memref<8x16xf32, #tpu.memory_space<vmem>>, vector<8x16xf32>
    tpu.vector_store %arg6[%c0_7, %c0_8], %19 {strides = array<i32>} : memref<8x16xf32, #tpu.memory_space<vmem>>, vector<8x16xf32>,
    return
  }
  func.func @transform_0(%arg0: i32, %arg1: i32) -> (i32, i32) {
    %c0_i32 = arith.constant 0 : i32
    return %arg0, %arg1 : i32, i32
  }
  func.func @transform_1(%arg0: i32, %arg1: i32) -> (i32, i32) {
    %c0_i32 = arith.constant 0 : i32
    return %arg0, %arg1 : i32, i32
  }
  func.func @transform_2(%arg0: i32, %arg1: i32) -> (i32, i32) {
    %c0_i32 = arith.constant 0 : i32
    return %arg0, %arg1 : i32, i32
  }
  func.func @transform_3(%arg0: i32, %arg1: i32) -> (i32, i32) {
    %c0_i32 = arith.constant 0 : i32
    %c0_i32_0 = arith.constant 0 : i32
    return %arg0, %c0_i32 : i32, i32
  }
  func.func @transform_4(%arg0: i32, %arg1: i32) -> (i32, i32) {
    %c0_i32 = arith.constant 0 : i32
    return %arg0, %arg1 : i32, i32
  }
}

</mosaic_0001>

<bundles_post_ra>
// kernel: tpu_custom_call.1
= control target key start
LH: loop header
LB: loop body
LE: loop exit
PB: predicated region body
PF: predicated region fallthrough
CT: control target
= control target key end

     0   :  { %9 = vsyncpa [#allocation3], 0  ;;  %s214_s0 = inlined_call_operand.vmem [shape: f32[8,16], index: 0, kind: input, shape index: {}]   ;;  %s215_s1 = inlined_call_operand.hbm [shape: f32[8,16], index: 1, kind: input, shape index: {}]   ;;  %s216_s2 = inlined_call_operand.hbm [shape: f32[8,16], index: 2, kind: input, shape index: {}]   ;;  %s217_s3 = inlined_call_operand.vmem [shape: f32[8,4], index: 3, kind: input, shape index: {}]   ;;  %s218_s4 = inlined_call_operand.hbm [shape: f32[8,16], index: 4, kind: output, shape index: {}]  }
   0x1   :  { %10 = vsyncpa [#allocation6], 0 }
   0x2   :  { %11 = vsyncpa [#allocation4], 0  ;;  %s167_s15 = smov [#allocation2]   ;;  %s168_s17 = smov [#allocation5]  }
   0x3   :  { %s20_s16 = sshll.u32 %s167_s15, 4  ;;  %s30_s18 = sshll.u32 %s168_s17, 4  ;;  %s21_s16 = int_to_ptr.vmem [resolvable:$true] %s20_s16  ;;  %s31_s18 = int_to_ptr.vmem [resolvable:$true] %s30_s18 }
   0x4   :  { %s109_s19 = scalar_lea.vmem %s21_s16, 128  ;;  %p114_p1 = scmp.lt.s32.totalorder %s21_s16, %s21_s16 }
   0x5   :  { %p110_p0 = scmp.ne.s32.totalorder %s21_s16, %s109_s19  ;;  %p115_p2 = scmp.lt.s32.totalorder %s109_s19, %s109_s19 }
   0x7   :  { %p116_p3 = por %p115_p2, %p114_p1 }
   0x9   :  { %p117_p4 = pnand %p116_p3, %p110_p0 }
   0xb   :  { %120 = shalt.err (!%p117_p4)
}
   0xc   :  { %23 = dma.hbm_to_vmem [thread:$0]  %s215_s1, 128, %s21_s16, [#allocation3]  }
   0xd   :  { %s129_s22 = scalar_lea.vmem %s31_s18, 128  ;;  %p134_p6 = scmp.lt.s32.totalorder %s31_s18, %s31_s18 }
   0xe   :  { %p130_p5 = scmp.ne.s32.totalorder %s31_s18, %s129_s22  ;;  %p135_p7 = scmp.lt.s32.totalorder %s129_s22, %s129_s22 }
  0x10   :  { %p136_p8 = por %p135_p7, %p134_p6 }
  0x12   :  { %p137_p9 = pnand %p136_p8, %p130_p5 }
  0x14   :  { %140 = shalt.err (!%p137_p9)
}
  0x15   :  { %33 = dma.hbm_to_vmem [thread:$0]  %s216_s2, 128, %s31_s18, [#allocation6]  }
  0x16   :  { %161 = dma.done.wait [#allocation3], 128  }
  0x17   :  { %162 = vsyncadd [#allocation3], 4294967168 }
  0x18   :  { %163 = dma.done.wait [#allocation6], 128  }
  0x19   :  { %164 = vsyncadd [#allocation6], 4294967168  ;;  %v169_v0 = vmov 1   ;;  %v170_v1 = vmov 3   ;;  %v45_v2 = vld [vmem:[%s217_s3] sm:$0xff]  ;;  %v171_v3 = vmov 0  }
  0x1a   :  { %96 = vset.pattern.permute.xlu0 %v169_v0  ;;  %98 = vset.pattern.permute.xlu1 %v170_v1  ;;  %v172_v4 = vmov 2   ;;  %v42_v5 = vld [vmem:[%s214_s0] sm:$0xff]  ;;  %v44_v13 = vld [vmem:[#allocation5] sm:$0xff]  ;;  %s173_s3 = smov [#allocation7]   ;;  %vm71_vm2 = vcmask 130048  }
  0x1b   :  { %58 = vperm.xlu0 %96, %v45_v2   ;;  %63 = vperm.xlu1 %98, %v45_v2   ;;  %v43_v9 = vld [vmem:[#allocation2] sm:$0xff]  ;;  %s79_s27 = sshll.u32 %s173_s3, 4  ;;  %s80_s27 = int_to_ptr.vmem [resolvable:$true] %s79_s27 }
  0x1c   :  { %vm68_vm0 = vcmp.gt.f32.partialorder %v43_v9, %v42_v5  ;;  %vm67_vm1 = vcmp.gt.f32.partialorder %v42_v5, %v43_v9  ;;  %s141_s0 = scalar_lea.vmem %s80_s27, 128  ;;  %p146_p11 = scmp.lt.s32.totalorder %s80_s27, %s80_s27 }
  0x1d   :  { %p142_p10 = scmp.ne.s32.totalorder %s80_s27, %s141_s0  ;;  %p147_p12 = scmp.lt.s32.totalorder %s141_s0, %s141_s0 }
  0x1f   :  { %97 = vset.pattern.permute.xlu0 %v171_v3  ;;  %99 = vset.pattern.permute.xlu1 %v172_v4  ;;  %p148_p13 = por %p147_p12, %p146_p11 }
  0x20   :  { %48 = vperm.xlu0 %97, %v45_v2   ;;  %53 = vperm.xlu1 %99, %v45_v2  }
  0x21   :  { %p149_p0 = pnand %p148_p13, %p142_p10 }
  0x24   :  { %100 = vset.pattern.permute.xlu0 %v170_v1 }
  0x96   :  { %v59_v6 = vpop.permute.xlu0 %58  ;;  %v64_v7 = vpop.permute.xlu1 %63 }
  0x97   :  { %v61_v8 = vmul.f32 %v59_v6, %v42_v5 }
  0x99   :  { %v66_v10 = vsub.f32 %v61_v8, %v64_v7 }
  0x9b   :  { %v49_v11 = vpop.permute.xlu0 %48  ;;  %v54_v12 = vpop.permute.xlu1 %53  ;;  %v69_v16 = vsel %vm68_vm0, %v66_v10, %v44_v13 }
  0x9c   :  { %v51_v14 = vmul.f32 %v49_v11, %v42_v5 }
  0x9e   :  { %v56_v15 = vsub.f32 %v51_v14, %v54_v12 }
  0xa0   :  { %v70_v17 = vsel %vm67_vm1, %v56_v15, %v69_v16 }
  0xa1   :  { %72 = vst.msk [vmem:[#allocation7] sm:$0xff] %vm71_vm2, %v70_v17 }
  0xa2   :  { %152 = shalt.err (!%p149_p0)
}
  0xa3   :  { %82 = dma.vmem_to_hbm [thread:$0]  %s80_s27, 128, %s218_s4, [#allocation4]  }
  0xa4   :  { %165 = dma.done.wait [#allocation4], 128  }
  0xa5   :  { %166 = vsyncadd [#allocation4], 4294967168 }
  0xa6   :  { %86 = vsyncpa [#allocation3], 1 }
  0xa7   :  { %87 = vsyncpa [#allocation6], 1 }
  0xa8   :  { %88 = vsyncpa [#allocation4], 1 }

</bundles_post_ra>
